<compile_context>
chip_gen: v7x
topology: tpu7x:2x2x1
jax: 0.10.0
libtpu: 0.0.40
codegen_flags: <defaults>
</compile_context>

<pallas_src>
import jax
import jax.numpy as jnp
from jax.experimental import pallas as pl
from jax.experimental.pallas import tpu as pltpu

N_INPUT = 3
N_OUTPUT = 5
N_HIDDEN = 20
N_LAYERS = 4          # 1 input layer + (N_LAYERS-1) hidden layers + 1 output layer
N_LINEAR = N_LAYERS + 1

P_FEAT = 32           # padded feature dim for weight/bias slabs and activations
P_IN = 8              # padded (sublane-aligned) input feature dim for x


def _round_up(x, m):
    return ((x + m - 1) // m) * m


def _mlp_kernel(x_ref, w_ref, b_ref, o_ref):
    # x_ref: (P_IN, tile_b)        zero-padded transposed inputs
    # w_ref: (5, P_FEAT, P_FEAT)   zero-padded weights, PyTorch (out, in) layout
    # b_ref: (5, P_FEAT, 1)        zero-padded biases (column vectors)
    # o_ref: (N_OUTPUT, tile_b)
    w = w_ref[...]
    b = b_ref[...]
    h = x_ref[...]                                   # (P_IN, tile_b)

    # Layer 1: (P_FEAT, P_IN) @ (P_IN, tile_b). Padded rows of W/b are zero, so
    # padded rows of h stay exactly zero after tanh and never contaminate later
    # layers (their matching weight columns are also zero).
    h = jnp.tanh(jnp.dot(w[0, :, :P_IN], h,
                         preferred_element_type=jnp.float32) + b[0])

    # Hidden layers 2..4: (P_FEAT, P_FEAT) @ (P_FEAT, tile_b)
    h = jnp.tanh(jnp.dot(w[1], h, preferred_element_type=jnp.float32) + b[1])
    h = jnp.tanh(jnp.dot(w[2], h, preferred_element_type=jnp.float32) + b[2])
    h = jnp.tanh(jnp.dot(w[3], h, preferred_element_type=jnp.float32) + b[3])

    # Output layer: take only the real output rows -> (N_OUTPUT, tile_b),
    # a lane-dense unmasked store.
    o_ref[...] = (jnp.dot(w[4, :N_OUTPUT, :], h,
                          preferred_element_type=jnp.float32)
                  + b[4, :N_OUTPUT, :])


def pack_params(params):
    """Pack [(W (out,in), b (out,)) x 5] into zero-padded slabs."""
    w_slab = jnp.zeros((N_LINEAR, P_FEAT, P_FEAT), dtype=jnp.float32)
    b_slab = jnp.zeros((N_LINEAR, P_FEAT, 1), dtype=jnp.float32)
    for l, (w, b) in enumerate(params):
        o, i = w.shape
        w_slab = w_slab.at[l, :o, :i].set(w.astype(jnp.float32))
        b_slab = b_slab.at[l, :o, 0].set(b.astype(jnp.float32))
    return w_slab, b_slab


def ann_dist_forward(x, params, *, tile_b=None):
    """x: (B, N_INPUT) float32; params: list of (W (out,in), b (out,)) like PyTorch."""
    B = x.shape[0]

    if tile_b is None:
        # Aim for >= 2 grid steps (v7x has 2 TCs; 'parallel' axis is sharded
        # across them) while keeping tiles lane-aligned and large enough to
        # amortize the per-step pipeline overhead.
        tile_b = min(2048, max(128, _round_up(pl.cdiv(B, 2), 128)))
    tile_b = _round_up(int(tile_b), 128)          # batch is the lane axis now
    Bp = _round_up(B, tile_b)
    grid = (Bp // tile_b,)

    # Layout plumbing in the wrapper (not in-kernel): transpose to feature-major
    # and zero-pad features to P_IN sublanes / batch to a lane-aligned multiple.
    x_t = jnp.pad(x.T.astype(jnp.float32),
                  ((0, P_IN - N_INPUT), (0, Bp - B)))     # (P_IN, Bp)

    w_slab, b_slab = pack_params(params)

    in_specs = [
        pl.BlockSpec((P_IN, tile_b), lambda i: (0, i)),                 # x
        pl.BlockSpec((N_LINEAR, P_FEAT, P_FEAT), lambda i: (0, 0, 0)),  # weights
        pl.BlockSpec((N_LINEAR, P_FEAT, 1), lambda i: (0, 0, 0)),       # biases
    ]
    out_spec = pl.BlockSpec((N_OUTPUT, tile_b), lambda i: (0, i))

    out_t = pl.pallas_call(
        _mlp_kernel,
        out_shape=jax.ShapeDtypeStruct((N_OUTPUT, Bp), jnp.float32),
        grid_spec=pltpu.PrefetchScalarGridSpec(
            num_scalar_prefetch=0,
            grid=grid,
            in_specs=in_specs,
            out_specs=out_spec,
        ),
        compiler_params=pltpu.CompilerParams(
            dimension_semantics=("parallel",)),
    )(x_t, w_slab, b_slab)

    # Back to batch-major (B, N_OUTPUT); drop batch padding.
    return out_t[:, :B].T


def init_params(key):
    """Deterministic Xavier-normal weights (PyTorch (out,in) layout), zero biases."""
    dims = [N_INPUT] + [N_HIDDEN] * N_LAYERS + [N_OUTPUT]
    params = []
    keys = jax.random.split(key, len(dims) - 1)
    for k, fan_in, fan_out in zip(keys, dims[:-1], dims[1:]):
        std = (2.0 / (fan_in + fan_out)) ** 0.5          # xavier_normal_ (gain=1)
        w = std * jax.random.normal(k, (fan_out, fan_in), dtype=jnp.float32)
        b = jnp.zeros((fan_out,), dtype=jnp.float32)
        params.append((w, b))
    return params


def reference_forward(x, params):
    h = x
    for (w, b) in params[:-1]:
        h = jnp.tanh(h @ w.T + b)
    w, b = params[-1]
    return h @ w.T + b


if __name__ == "__main__":
    key = jax.random.PRNGKey(0)
    k_param, k_x = jax.random.split(key)

    params = init_params(k_param)

    B = 512  # small batch; adaptive tiling -> tile_b=256, grid=(2,)
    x = jax.random.normal(k_x, (B, N_INPUT), dtype=jnp.float32)

    out = ann_dist_forward(x, params)
    out = jax.block_until_ready(out)

    ref = reference_forward(x, params)
    assert out.shape == (B, N_OUTPUT)
    assert jnp.allclose(out, ref, atol=1e-5, rtol=1e-5), "mismatch vs reference"

    print("KERNEL_OK")
</pallas_src>

<mosaic_0001>
module attributes {stable_mosaic.version = 11 : i64} {
  func.func @_mlp_kernel(%arg0: i32, %arg1: memref<8x256xf32, #tpu.memory_space<vmem>>, %arg2: memref<5x32x32xf32, #tpu.memory_space<vmem>>, %arg3: memref<5x32x1xf32, #tpu.memory_space<vmem>>, %arg4: memref<5x256xf32, #tpu.memory_space<vmem>>) attributes {dimension_semantics = [#tpu.dimension_semantics<parallel>], iteration_bounds = array<i64: 2>, scalar_prefetch = 0 : i64, scratch_operands = 0 : i64, tpu.core_type = #tpu.core_type<tc>, window_params = [{transform_indices = @transform_0, window_bounds = array<i64: 8, 256>}, {pipeline_mode = #tpu.pipeline_mode<synchronous>, transform_indices = @transform_1, window_bounds = array<i64: 5, 32, 32>}, {pipeline_mode = #tpu.pipeline_mode<synchronous>, transform_indices = @transform_2, window_bounds = array<i64: 5, 32, 1>}, {transform_indices = @transform_3, window_bounds = array<i64: 5, 256>}]} {
    %c0 = arith.constant 0 : index
    %c0_0 = arith.constant 0 : index
    %c0_1 = arith.constant 0 : index
    %0 = vector.load %arg2[%c0, %c0_0, %c0_1] : memref<5x32x32xf32, #tpu.memory_space<vmem>>, vector<5x32x32xf32>
    %c0_2 = arith.constant 0 : index
    %c0_3 = arith.constant 0 : index
    %c0_4 = arith.constant 0 : index
    %1 = vector.load %arg3[%c0_2, %c0_3, %c0_4] : memref<5x32x1xf32, #tpu.memory_space<vmem>>, vector<5x32x1xf32>
    %c0_5 = arith.constant 0 : index
    %c0_6 = arith.constant 0 : index
    %2 = vector.load %arg1[%c0_5, %c0_6] : memref<8x256xf32, #tpu.memory_space<vmem>>, vector<8x256xf32>
    %3 = vector.extract_strided_slice %0 {offsets = [0, 0, 0], sizes = [1, 32, 8], strides = [1, 1, 1]} : vector<5x32x32xf32> to vector<1x32x8xf32>
    %4 = vector.shape_cast %3 : vector<1x32x8xf32> to vector<32x8xf32>
    %cst = arith.constant dense<0.000000e+00> : vector<32x256xf32>
    %5 = tpu.matmul %4, %2, %cst {dimension_numbers = #tpu.dot_dimension_numbers<[1], [0], [0], [1], [0, 0, 1, 1], [], []>} : vector<32x8xf32>, vector<8x256xf32>, vector<32x256xf32> -> vector<32x256xf32>
    %6 = vector.extract_strided_slice %1 {offsets = [0, 0, 0], sizes = [1, 32, 1], strides = [1, 1, 1]} : vector<5x32x1xf32> to vector<1x32x1xf32>
    %7 = vector.shape_cast %6 : vector<1x32x1xf32> to vector<32x1xf32>
    %8 = vector.broadcast %7 : vector<32x1xf32> to vector<32x256xf32>
    %9 = arith.addf %5, %8 : vector<32x256xf32>
    %10 = math.tanh %9 : vector<32x256xf32>
    %11 = vector.extract_strided_slice %0 {offsets = [1, 0, 0], sizes = [1, 32, 32], strides = [1, 1, 1]} : vector<5x32x32xf32> to vector<1x32x32xf32>
    %12 = vector.shape_cast %11 : vector<1x32x32xf32> to vector<32x32xf32>
    %cst_7 = arith.constant dense<0.000000e+00> : vector<32x256xf32>
    %13 = tpu.matmul %12, %10, %cst_7 {dimension_numbers = #tpu.dot_dimension_numbers<[1], [0], [0], [1], [0, 0, 1, 1], [], []>} : vector<32x32xf32>, vector<32x256xf32>, vector<32x256xf32> -> vector<32x256xf32>
    %14 = vector.extract_strided_slice %1 {offsets = [1, 0, 0], sizes = [1, 32, 1], strides = [1, 1, 1]} : vector<5x32x1xf32> to vector<1x32x1xf32>
    %15 = vector.shape_cast %14 : vector<1x32x1xf32> to vector<32x1xf32>
    %16 = vector.broadcast %15 : vector<32x1xf32> to vector<32x256xf32>
    %17 = arith.addf %13, %16 : vector<32x256xf32>
    %18 = math.tanh %17 : vector<32x256xf32>
    %19 = vector.extract_strided_slice %0 {offsets = [2, 0, 0], sizes = [1, 32, 32], strides = [1, 1, 1]} : vector<5x32x32xf32> to vector<1x32x32xf32>
    %20 = vector.shape_cast %19 : vector<1x32x32xf32> to vector<32x32xf32>
    %cst_8 = arith.constant dense<0.000000e+00> : vector<32x256xf32>
    %21 = tpu.matmul %20, %18, %cst_8 {dimension_numbers = #tpu.dot_dimension_numbers<[1], [0], [0], [1], [0, 0, 1, 1], [], []>} : vector<32x32xf32>, vector<32x256xf32>, vector<32x256xf32> -> vector<32x256xf32>
    %22 = vector.extract_strided_slice %1 {offsets = [2, 0, 0], sizes = [1, 32, 1], strides = [1, 1, 1]} : vector<5x32x1xf32> to vector<1x32x1xf32>
    %23 = vector.shape_cast %22 : vector<1x32x1xf32> to vector<32x1xf32>
    %24 = vector.broadcast %23 : vector<32x1xf32> to vector<32x256xf32>
    %25 = arith.addf %21, %24 : vector<32x256xf32>
    %26 = math.tanh %25 : vector<32x256xf32>
    %27 = vector.extract_strided_slice %0 {offsets = [3, 0, 0], sizes = [1, 32, 32], strides = [1, 1, 1]} : vector<5x32x32xf32> to vector<1x32x32xf32>
    %28 = vector.shape_cast %27 : vector<1x32x32xf32> to vector<32x32xf32>
    %cst_9 = arith.constant dense<0.000000e+00> : vector<32x256xf32>
    %29 = tpu.matmul %28, %26, %cst_9 {dimension_numbers = #tpu.dot_dimension_numbers<[1], [0], [0], [1], [0, 0, 1, 1], [], []>} : vector<32x32xf32>, vector<32x256xf32>, vector<32x256xf32> -> vector<32x256xf32>
    %30 = vector.extract_strided_slice %1 {offsets = [3, 0, 0], sizes = [1, 32, 1], strides = [1, 1, 1]} : vector<5x32x1xf32> to vector<1x32x1xf32>
    %31 = vector.shape_cast %30 : vector<1x32x1xf32> to vector<32x1xf32>
    %32 = vector.broadcast %31 : vector<32x1xf32> to vector<32x256xf32>
    %33 = arith.addf %29, %32 : vector<32x256xf32>
    %34 = math.tanh %33 : vector<32x256xf32>
    %35 = vector.extract_strided_slice %0 {offsets = [4, 0, 0], sizes = [1, 5, 32], strides = [1, 1, 1]} : vector<5x32x32xf32> to vector<1x5x32xf32>
    %36 = vector.shape_cast %35 : vector<1x5x32xf32> to vector<5x32xf32>
    %cst_10 = arith.constant dense<0.000000e+00> : vector<5x256xf32>
    %37 = tpu.matmul %36, %34, %cst_10 {dimension_numbers = #tpu.dot_dimension_numbers<[1], [0], [0], [1], [0, 0, 1, 1], [], []>} : vector<5x32xf32>, vector<32x256xf32>, vector<5x256xf32> -> vector<5x256xf32>
    %38 = vector.extract_strided_slice %1 {offsets = [4, 0, 0], sizes = [1, 5, 1], strides = [1, 1, 1]} : vector<5x32x1xf32> to vector<1x5x1xf32>
    %39 = vector.shape_cast %38 : vector<1x5x1xf32> to vector<5x1xf32>
    %40 = vector.broadcast %39 : vector<5x1xf32> to vector<5x256xf32>
    %41 = arith.addf %37, %40 : vector<5x256xf32>
    %c0_11 = arith.constant 0 : index
    %c0_12 = arith.constant 0 : index
    %42 = vector.load %arg4[%c0_11, %c0_12] : memref<5x256xf32, #tpu.memory_space<vmem>>, vector<5x256xf32>
    tpu.vector_store %arg4[%c0_11, %c0_12], %41 {strides = array<i32>} : memref<5x256xf32, #tpu.memory_space<vmem>>, vector<5x256xf32>,
    return
  }
  func.func @transform_0(%arg0: i32) -> (i32, i32) {
    %c0_i32 = arith.constant 0 : i32
    %c0_i32_0 = arith.constant 0 : i32
    return %c0_i32, %arg0 : i32, i32
  }
  func.func @transform_1(%arg0: i32) -> (i32, i32, i32) {
    %c0_i32 = arith.constant 0 : i32
    %c0_i32_0 = arith.constant 0 : i32
    %c0_i32_1 = arith.constant 0 : i32
    %c0_i32_2 = arith.constant 0 : i32
    return %c0_i32, %c0_i32_0, %c0_i32_1 : i32, i32, i32
  }
  func.func @transform_2(%arg0: i32) -> (i32, i32, i32) {
    %c0_i32 = arith.constant 0 : i32
    %c0_i32_0 = arith.constant 0 : i32
    %c0_i32_1 = arith.constant 0 : i32
    %c0_i32_2 = arith.constant 0 : i32
    return %c0_i32, %c0_i32_0, %c0_i32_1 : i32, i32, i32
  }
  func.func @transform_3(%arg0: i32) -> (i32, i32) {
    %c0_i32 = arith.constant 0 : i32
    %c0_i32_0 = arith.constant 0 : i32
    return %c0_i32, %arg0 : i32, i32
  }
}

</mosaic_0001>

<bundles_post_ra>
// kernel: tpu_custom_call.1
= control target key start
LH: loop header
LB: loop body
LE: loop exit
PB: predicated region body
PF: predicated region fallthrough
CT: control target
= control target key end

     0   :  { %8 = vsyncpa [#allocation3], 0  ;;  %s1511_s0 = inlined_call_operand.hbm [shape: f32[8,512], index: 0, kind: input, shape index: {}]   ;;  %s1512_s1 = inlined_call_operand.vmem [shape: f32[5,32,32], index: 1, kind: input, shape index: {}]   ;;  %s1513_s2 = inlined_call_operand.vmem [shape: f32[5,32,1], index: 2, kind: input, shape index: {}]   ;;  %s1514_s3 = inlined_call_operand.hbm [shape: f32[5,512], index: 3, kind: output, shape index: {}]  }
   0x1   :  { %10 = vsyncpa [#allocation3 + $0x1], 0 }
   0x2   :  { %11 = vsyncpa [#allocation4], 0 }
   0x3   :  { %13 = vsyncpa [#allocation4 + $0x1], 0  ;;  %s1210_s12 = smov 0   ;;  %s1212_s13 = smov 0  }
   0x4   :  { %s1214_s14 = smov 0   ;;  %s1216_s15 = smov 0  }
   0x5 LB: > { %s1231_s16 = sadd.s32 4294967295, %s1184_s15   ;;  %s909_s17 = sadd.s32 4294967294, %s1184_s15   ;;  %s1184_s15 = sphi %s1216_s15, %s1529_s15   ;;  %s1180_s14 = sphi %s1214_s14, %s1528_s14   ;;  %s1176_s13 = sphi %s1212_s13, %s1527_s13   ;;  %s1172_s12 = sphi %s1210_s12, %s1526_s12  }
   0x6   : > { %s1235_s18 = sadd.s32 1, %s1184_s15   ;;  %s26_s19 = sadd.s32 1, %s1180_s14 }
   0x7   : > { %s23_s20 = ssub.s32 %s1184_s15, %s1235_s18  ;;  %p33_p0 = scmp.ne.s32.totalorder %s1180_s14, %s1176_s13 }
   0x8   : > { %p24_p1 = scmp.eq.s32.totalorder %s23_s20, 0  ;;  %p34_p2 = scmp.eq.s32.totalorder %s1184_s15, 0 }
   0x9   : > { %p39_p3 = scmp.ne.s32.totalorder %s1176_s13, %s1172_s12  ;;  %p40_p4 = scmp.eq.s32.totalorder %s1231_s16, 0 }
   0xa   : > { %s1247_s21 = scalar_select %p24_p1, %s1180_s14, %s26_s19  }
   0xb   : > { %p1249_p5 = por %p34_p2, %p33_p0  ;;  %p1253_p6 = por %p40_p4, %p39_p3 }
   0xc   : > { %p105_p7 = scmp.eq.s32.totalorder %s1231_s16, 1  ;;  %p111_p8 = scmp.eq.s32.totalorder %s909_s17, 1 }
   0xd   : > { %p986_p10 = scmp.lt.s32.totalorder %s1184_s15, 2  ;;  %s137_s26 = sand.u32 1, %s1180_s14  }
   0xe   : > { %p1260_p11 = por %p105_p7, %p33_p0  ;;  %p1264_p12 = por %p111_p8, %p39_p3 }
   0xf   : > { %s940_s27 = sshll.u32 %s1184_s15, 8  ;;  %s912_s28 = sshll.u32 %s137_s26, 4 }
  0x10   : > { %s1518_s24 = scalar_select %p1260_p11, 1, 0 }
  0x11   : > { %s1519_s25 = scalar_select %p1264_p12, 1, 0 }
  0x12   : > { %s1273_s4 = scalar_lea.hbm %s1511_s0, %s940_s27  ;;  %s141_s5 = scalar_lea.vmem [#allocation2], %s912_s28 }
  0x13   : > { %s149_s6 = sshll.u32 %s141_s5, 4  ;;  %p1277_p13 = pnand %p986_p10, %p1249_p5  ;;  %s1281_s6 = int_to_ptr.vmem [resolvable:$true] %s149_s6 }
  0x14   : > { %s138_s8 = scalar_lea.sflag [#allocation3], %s137_s26  ;;  %s1088_s9 = scalar_lea.hbm %s1273_s4, 256 }
  0x15   : > { %p1089_p2 = scmp.ne.s32.totalorder %s1273_s4, %s1088_s9  ;;  %p1090_p3 = pneg %p1277_p13 }
  0x16   : > { %s1093_s17 = scalar_lea.hbm %s1511_s0, 512  ;;  %p1094_p5 = scmp.lt.u32.totalorder %s1273_s4, %s1511_s0 }
  0x17   : > { %p1091_p4 = pnand %p1090_p3, %p1089_p2  ;;  %p1095_p8 = scmp.lt.u32.totalorder %s1093_s17, %s1088_s9 }
  0x18   : > { %p1097_p9 = scmp.lt.u32.totalorder %s1088_s9, %s1273_s4 }
  0x19   : > { %p1092_p7 = pneg %p1091_p4  ;;  %p1096_p10 = por %p1095_p8, %p1094_p5 }
  0x1b   : > { %p1098_p0 = por %p1097_p9, %p1096_p10 }
  0x1d   : > { %p1099_p1 = pnand %p1098_p0, %p1092_p7 }
  0x1f   : > { %1102 = shalt.err (!%p1099_p1)
}
  0x20   : > { %s1103_s22 = scalar_lea.vmem %s1281_s6, 256  ;;  %s1186_s26 = smov [#allocation2]  }
  0x21   : > { %p1104_p2 = scmp.ne.s32.totalorder %s1281_s6, %s1103_s22  ;;  %s1108_s27 = sshll.u32 %s1186_s26, 4  ;;  %s1109_s27 = int_to_ptr.vmem [resolvable:$false] %s1108_s27 }
  0x22   : > { %s1110_s28 = scalar_lea.vmem %s1109_s27, 512  ;;  %p1111_p11 = scmp.lt.s32.totalorder %s1281_s6, %s1109_s27 }
  0x23   : > { %p1106_p4 = pnand %p1104_p2, %p1090_p3  ;;  %p1112_p5 = scmp.lt.s32.totalorder %s1110_s28, %s1103_s22 }
  0x25   : > { %p1107_p12 = pneg %p1106_p4  ;;  %p1113_p8 = por %p1112_p5, %p1111_p11 }
  0x27   : > { %p1114_p9 = pnand %p1113_p8, %p1107_p12 }
  0x29   : > { %1117 = shalt.err (!%p1114_p9)
}
  0x2a   : > { %981 = dma.hbm_to_vmem [thread:$0]  (!%p1277_p13), %s1273_s4, 256, %s1281_s6, %s138_s8  }
  0x2b   : > { %p1521_p0 = scmp.lt.s32.totalorder %s1184_s15, 3  ;;  %p1522_p1 = scmp.ge.s32.totalorder %s1184_s15, 1 }
  0x2d   : > { %p155_p3 = pnand %p1522_p1, %p1521_p0 }
  0x2e   : > { %s1315_s29 = sand.u32 (!%p155_p3), 1, %s1176_s13  }
  0x2f   : > { %158 = sbr.rel (%p155_p3) target bundleno = 1265 (0x4f1), region = 32  ;;  %s916_s30 = sshll.u32 (!%p155_p3), %s1315_s29, 4 }
  0x30   : > { %s161_s5 = scalar_lea.sflag (!%p155_p3), [#allocation3], %s1315_s29  ;;  %s164_s7 = scalar_lea.vmem (!%p155_p3), [#allocation2], %s916_s30 }
  0x36   : > { %1163 = dma.done.wait (%p1253_p6), %s161_s5, 256  }
  0x37   : > { %1165 = vsyncadd (%p1253_p6), %s161_s5, 4294967040  ;;  %v1187_v0 = vmov 0.0   ;;  %v1188_v1 = vmov 0   ;;  %v224_v2 = vld [vmem:[%s164_s7 + $0x8] sm:$0xff]  ;;  %v223_v3 = vld [vmem:[%s164_s7] sm:$0xff]  ;;  %vm245_vm0 = vcmask 64512  }
  0x38   : > { %322 = vmatprep.mubr.f32.mxu0 %v1187_v0  ;;  %1022 = vset.pattern.permute.xlu0 %v1188_v1  ;;  %v189_v4 = vld [vmem:[%s1512_s1] sm:$0xff]  ;;  %v208_v6 = vld [vmem:[%s1513_s2 + $0x10] sm:$0xff]  ;;  %v190_v7 = vld [vmem:[%s1512_s1 + $0x8] sm:$0xff]  ;;  %vm375_vm1 = vcmask 261120   ;;  %s941_s9 = sshll.u32 %s1231_s16, 8  ;;  %s186_s10 = scalar_lea.vmem [#allocation5], %s916_s30 }
  0x39   : > { %1023 = vset.pattern.permute.xlu1 %v1188_v1  ;;  %452 = vmatprep.mubr.f32.mxu1 %v1187_v0  ;;  %v206_v5 = vld [vmem:[%s1513_s2] sm:$0xff]  ;;  %v207_v8 = vld [vmem:[%s1513_s2 + $0x8] sm:$0xff]  ;;  %v209_v9 = vld [vmem:[%s1513_s2 + $0x18] sm:$0xff]  ;;  %s839_s11 = sshll.u32 %s186_s10, 4  ;;  %s1467_s20 = scalar_lea.hbm %s1514_s3, %s941_s9  ;;  %s1469_s11 = int_to_ptr.vmem [resolvable:$true] %s839_s11 }
  0x3a   : > { %258 = vmatprep.subr.mxu0 %v224_v2  ;;  %227 = vperm.xlu0 %1022, %v206_v5   ;;  %v191_v10 = vld [vmem:[%s1512_s1 + $0x10] sm:$0xff]  ;;  %v210_v11 = vld [vmem:[%s1513_s2 + $0x20] sm:$0xff]  ;;  %v211_v12 = vld [vmem:[%s1513_s2 + $0x28] sm:$0xff]  ;;  %s825_s16 = scalar_lea.sflag [#allocation4], %s1315_s29  ;;  %s1118_s30 = scalar_lea.vmem %s1469_s11, 256 }
  0x3b   : > { %259 = vmatpush1.msra.mxu0 %v223_v3  ;;  %237 = vperm.xlu1 %1023, %v208_v6   ;;  %v192_v13 = vld [vmem:[%s1512_s1 + $0x18] sm:$0xff]  ;;  %v212_v14 = vld [vmem:[%s1513_s2 + $0x30] sm:$0xff]  ;;  %v214_v16 = vld [vmem:[%s1513_s2 + $0x40] sm:$0xff]  ;;  %p1119_p6 = scmp.ne.s32.totalorder %s1469_s11, %s1118_s30  ;;  %p1523_p11 = scmp.ne.s32.totalorder %s1518_s24, 0 }
  0x3c   : > { %918 = vmatmul.mubr.msk.f32.vlgmr.msra.gmra.mrb[0].mxu0 %vm245_vm0, %v189_v4  ;;  %v213_v15 = vld [vmem:[%s1513_s2 + $0x38] sm:$0xff]  ;;  %v215_v17 = vld [vmem:[%s1513_s2 + $0x48] sm:$0xff]  ;;  %v216_v18 = vld [vmem:[%s1513_s2 + $0x50] sm:$0xff]  ;;  %s1189_s22 = smov [#allocation5]  }
  0x3d   : > { %328 = vmatprep.mubr.f32.mxu0 %v1187_v0  ;;  %v217_v19 = vld [vmem:[%s1513_s2 + $0x58] sm:$0xff]  ;;  %v218_v20 = vld [vmem:[%s1513_s2 + $0x60] sm:$0xff]  ;;  %v219_v21 = vld [vmem:[%s1513_s2 + $0x68] sm:$0xff]  ;;  %p1120_p12 = pnand %p1119_p6, %p1523_p11  ;;  %s1122_s26 = sshll.u32 %s1189_s22, 4  ;;  %s1123_s26 = int_to_ptr.vmem [resolvable:$false] %s1122_s26 }
  0x3e   : > { %232 = vperm.xlu0 %1022, %v207_v8   ;;  %v220_v22 = vld [vmem:[%s1513_s2 + $0x70] sm:$0xff]  ;;  %v221_v23 = vld [vmem:[%s1513_s2 + $0x78] sm:$0xff]  ;;  %v222_v24 = vld [vmem:[%s1513_s2 + $0x80] sm:$0xff]  ;;  %s1124_s27 = scalar_lea.vmem %s1123_s26, 512  ;;  %p1125_p7 = scmp.lt.s32.totalorder %s1469_s11, %s1123_s26 }
  0x3f   : > { %242 = vperm.xlu1 %1023, %v209_v9   ;;  %v193_v57 = vld [vmem:[%s1512_s1 + $0x20] sm:$0xff]  ;;  %v194_v58 = vld [vmem:[%s1512_s1 + $0x28] sm:$0xff]  ;;  %v195_v59 = vld [vmem:[%s1512_s1 + $0x30] sm:$0xff]  ;;  %p1121_p13 = pneg %p1120_p12  ;;  %p1126_p10 = scmp.lt.s32.totalorder %s1124_s27, %s1118_s30 }
  0x40   : > { %919 = vmatmul.mubr.msk.f32.gmra.mrb[2].mxu0 %vm245_vm0, %v190_v7  ;;  %v196_v60 = vld [vmem:[%s1512_s1 + $0x38] sm:$0xff] }
  0x41   : > { %334 = vmatprep.mubr.f32.mxu0 %v1187_v0  ;;  %p1127_p2 = por %p1126_p10, %p1125_p7 }
  0x42   : > { %357 = vperm.xlu0 %1022, %v210_v11  }
  0x43   : > { %362 = vperm.xlu1 %1023, %v211_v12   ;;  %p1128_p4 = pnand %p1127_p2, %p1121_p13 }
  0x44   : > { %920 = vmatmul.mubr.msk.f32.gmra.mrb[4].mxu0 %vm245_vm0, %v191_v10 }
  0x45   : > { %340 = vmatprep.mubr.f32.mxu0 %v1187_v0 }
  0x46   : > { %367 = vperm.xlu0 %1022, %v212_v14  }
  0x47   : > { %372 = vperm.xlu1 %1023, %v213_v15  }
  0x48   : > { %921 = vmatmul.mubr.msk.f32.gmra.mrb[6].mxu0 %vm245_vm0, %v192_v13 }
  0x49   : > { %581 = vmatprep.mubr.f32.mxu0 %v1187_v0 }
  0x4a   : > { %487 = vperm.xlu0 %1022, %v214_v16  }
  0x4b   : > { %492 = vperm.xlu1 %1023, %v215_v17  }
  0x4e   : > { %497 = vperm.xlu0 %1022, %v216_v18  }
  0x4f   : > { %502 = vperm.xlu1 %1023, %v217_v19  }
  0x52   : > { %616 = vperm.xlu0 %1022, %v218_v20  }
  0x53   : > { %621 = vperm.xlu1 %1023, %v219_v21  }
  0x56   : > { %626 = vperm.xlu0 %1022, %v220_v22  }
  0x57   : > { %631 = vperm.xlu1 %1023, %v221_v23  }
  0x5a   : > { %745 = vperm.xlu0 %1022, %v222_v24  }
  0xb9   : > { %v228_v25 = vpop.permute.xlu0 %227 }
  0xba   : > { %v238_v34 = vpop.permute.xlu1 %237 }
  0xbd   : > { %v233_v30 = vpop.permute.xlu0 %232 }
  0xbe   : > { %v243_v40 = vpop.permute.xlu1 %242 }
  0xc1   : > { %v358_v61 = vpop.permute.xlu0 %357 }
  0xc2   : > { %v363_v3 = vpop.permute.xlu1 %362 }
  0xc5   : > { %v368_v8 = vpop.permute.xlu0 %367 }
  0xc6   : > { %v373_v13 = vpop.permute.xlu1 %372 }
 0x10f   : > { %v324_v26 = vpop.f32.mrb[0].mxu0 }
 0x110   : > { %v325_v27 = vadd.f32 %v324_v26, %v228_v25  ;;  %v326_v28 = vpop.f32.mrb[1].mxu0 }
 0x111   : > { %v327_v29 = vadd.f32 %v326_v28, %v228_v25 }
 0x112   : > { %1024 = vtanh.f32 %v325_v27 }
 0x113   : > { %v330_v31 = vpop.f32.mrb[2].mxu0  ;;  %1026 = vtanh.f32 %v327_v29 }
 0x114   : > { %v331_v32 = vadd.f32 %v330_v31, %v233_v30  ;;  %v332_v33 = vpop.f32.mrb[3].mxu0  ;;  %v198_v31 = vld [vmem:[%s1512_s1 + $0x48] sm:$0xff] }
 0x115   : > { %v333_v35 = vadd.f32 %v332_v33, %v233_v30  ;;  %v197_v30 = vld [vmem:[%s1512_s1 + $0x40] sm:$0xff]  ;;  %v200_v33 = vld [vmem:[%s1512_s1 + $0x58] sm:$0xff] }
 0x116   : > { %1028 = vtanh.f32 %v331_v32  ;;  %v199_v32 = vld [vmem:[%s1512_s1 + $0x50] sm:$0xff] }
 0x117   : > { %1030 = vtanh.f32 %v333_v35  ;;  %v336_v36 = vpop.f32.mrb[4].mxu0 }
 0x118   : > { %v337_v37 = vadd.f32 %v336_v36, %v238_v34  ;;  %v338_v38 = vpop.f32.mrb[5].mxu0 }
 0x119   : > { %v339_v39 = vadd.f32 %v338_v38, %v238_v34  ;;  %v488_v34 = vpop.permute.xlu0 %487 }
 0x11a   : > { %1032 = vtanh.f32 %v337_v37 }
 0x11b   : > { %v342_v41 = vpop.f32.mrb[6].mxu0  ;;  %1034 = vtanh.f32 %v339_v39  ;;  %v493_v39 = vpop.permute.xlu1 %492 }
 0x11c   : > { %v343_v42 = vadd.f32 %v342_v41, %v243_v40  ;;  %v344_v43 = vpop.f32.mrb[7].mxu0  ;;  %v1025_v45 = vpop.eup %1024 }
 0x11d   : > { %v345_v44 = vadd.f32 %v344_v43, %v243_v40  ;;  %v1027_v46 = vpop.eup %1026 }
 0x11e   : > { %1036 = vtanh.f32 %v343_v42 }
 0x11f   : > { %1038 = vtanh.f32 %v345_v44  ;;  %v498_v44 = vpop.permute.xlu0 %497 }
 0x120   : > { %v1029_v47 = vpop.eup %1028 }
 0x121   : > { %v1031_v48 = vpop.eup %1030  ;;  %v944_v49 = vpack.c.bf16 %v1029_v47, %v1025_v45 }
 0x122   : > { %v942_v50 = vpack.c.bf16 %v1031_v48, %v1027_v46 }
 0x124   : > { %943 = vmatprep.subr.bf16.mxu1 %v942_v50  ;;  %v1033_v51 = vpop.eup %1032 }
 0x125   : > { %945 = vmatpush1.bf16.msra.mxu1 %v944_v49  ;;  %v1035_v52 = vpop.eup %1034  ;;  %v503_v49 = vpop.permute.xlu1 %502 }
 0x128   : > { %v1037_v53 = vpop.eup %1036 }
 0x129   : > { %v1039_v54 = vpop.eup %1038  ;;  %v948_v55 = vpack.c.bf16 %v1037_v53, %v1033_v51 }
 0x12a   : > { %v946_v56 = vpack.c.bf16 %v1039_v54, %v1035_v52 }
 0x12c   : > { %947 = vmatprep.subr.bf16.mxu1 %v946_v56 }
 0x12d   : > { %949 = vmatpush1.bf16.msra.mxu1 %v948_v55 }
 0x130   : > { %922 = vmatmul.mubr.msk.f32.vlgmr.msra.gmra.mrb[0].mxu1 %vm375_vm1, %v193_v57 }
 0x131   : > { %458 = vmatprep.mubr.f32.mxu1 %v1187_v0 }
 0x134   : > { %923 = vmatmul.mubr.msk.f32.gmra.mrb[2].mxu1 %vm375_vm1, %v194_v58 }
 0x135   : > { %464 = vmatprep.mubr.f32.mxu1 %v1187_v0 }
 0x138   : > { %924 = vmatmul.mubr.msk.f32.gmra.mrb[4].mxu1 %vm375_vm1, %v195_v59 }
 0x139   : > { %470 = vmatprep.mubr.f32.mxu1 %v1187_v0 }
 0x13c   : > { %925 = vmatmul.mubr.msk.f32.gmra.mrb[6].mxu1 %vm375_vm1, %v196_v60 }
 0x13d   : > { %710 = vmatprep.mubr.f32.mxu1 %v1187_v0 }
 0x203   : > { %v454_v62 = vpop.f32.mrb[0].mxu1 }
 0x204   : > { %v455_v63 = vadd.f32 %v454_v62, %v358_v61  ;;  %v456_v1 = vpop.f32.mrb[1].mxu1 }
 0x205   : > { %v457_v2 = vadd.f32 %v456_v1, %v358_v61 }
 0x206   : > { %1040 = vtanh.f32 %v455_v63 }
 0x207   : > { %v460_v4 = vpop.f32.mrb[2].mxu1  ;;  %1042 = vtanh.f32 %v457_v2 }
 0x208   : > { %v461_v5 = vadd.f32 %v460_v4, %v363_v3  ;;  %v462_v6 = vpop.f32.mrb[3].mxu1  ;;  %v202_v4 = vld [vmem:[%s1512_s1 + $0x68] sm:$0xff] }
 0x209   : > { %v463_v7 = vadd.f32 %v462_v6, %v363_v3  ;;  %v201_v3 = vld [vmem:[%s1512_s1 + $0x60] sm:$0xff]  ;;  %v204_v6 = vld [vmem:[%s1512_s1 + $0x78] sm:$0xff] }
 0x20a   : > { %1044 = vtanh.f32 %v461_v5  ;;  %v203_v5 = vld [vmem:[%s1512_s1 + $0x70] sm:$0xff] }
 0x20b   : > { %1046 = vtanh.f32 %v463_v7  ;;  %v466_v9 = vpop.f32.mrb[4].mxu1  ;;  %v617_v7 = vpop.permute.xlu0 %616 }
 0x20c   : > { %v467_v10 = vadd.f32 %v466_v9, %v368_v8  ;;  %v468_v11 = vpop.f32.mrb[5].mxu1 }
 0x20d   : > { %v469_v12 = vadd.f32 %v468_v11, %v368_v8 }
 0x20e   : > { %1048 = vtanh.f32 %v467_v10 }
 0x20f   : > { %v472_v14 = vpop.f32.mrb[6].mxu1  ;;  %1050 = vtanh.f32 %v469_v12  ;;  %v622_v12 = vpop.permute.xlu1 %621 }
 0x210   : > { %v473_v15 = vadd.f32 %v472_v14, %v373_v13  ;;  %v474_v16 = vpop.f32.mrb[7].mxu1  ;;  %v1041_v18 = vpop.eup %1040 }
 0x211   : > { %v475_v17 = vadd.f32 %v474_v16, %v373_v13  ;;  %v1043_v19 = vpop.eup %1042 }
 0x212   : > { %1052 = vtanh.f32 %v473_v15 }
 0x213   : > { %1054 = vtanh.f32 %v475_v17 }
 0x214   : > { %v1045_v20 = vpop.eup %1044 }
 0x215   : > { %v1047_v21 = vpop.eup %1046  ;;  %v952_v22 = vpack.c.bf16 %v1045_v20, %v1041_v18 }
 0x216   : > { %v950_v23 = vpack.c.bf16 %v1047_v21, %v1043_v19  ;;  %v632_v21 = vpop.permute.xlu1 %631 }
 0x218   : > { %951 = vmatprep.subr.bf16.mxu0 %v950_v23  ;;  %v1049_v24 = vpop.eup %1048 }
 0x219   : > { %953 = vmatpush1.bf16.msra.mxu0 %v952_v22  ;;  %v1051_v25 = vpop.eup %1050 }
 0x21c   : > { %v1053_v26 = vpop.eup %1052 }
 0x21d   : > { %v1055_v27 = vpop.eup %1054  ;;  %v956_v28 = vpack.c.bf16 %v1053_v26, %v1049_v24 }
 0x21e   : > { %v954_v29 = vpack.c.bf16 %v1055_v27, %v1051_v25 }
 0x220   : > { %955 = vmatprep.subr.bf16.mxu0 %v954_v29 }
 0x221   : > { %957 = vmatpush1.bf16.msra.mxu0 %v956_v28 }
 0x224   : > { %926 = vmatmul.mubr.msk.f32.vlgmr.msra.gmra.mrb[8].mxu0 %vm375_vm1, %v197_v30 }
 0x225   : > { %587 = vmatprep.mubr.f32.mxu0 %v1187_v0 }
 0x228   : > { %927 = vmatmul.mubr.msk.f32.gmra.mrb[10].mxu0 %vm375_vm1, %v198_v31 }
 0x229   : > { %593 = vmatprep.mubr.f32.mxu0 %v1187_v0 }
 0x22c   : > { %928 = vmatmul.mubr.msk.f32.gmra.mrb[12].mxu0 %vm375_vm1, %v199_v32 }
 0x22d   : > { %599 = vmatprep.mubr.f32.mxu0 %v1187_v0 }
 0x230   : > { %929 = vmatmul.mubr.msk.f32.gmra.mrb[14].mxu0 %vm375_vm1, %v200_v33 }
 0x231   : > { %815 = vmatprep.mubr.f32.mxu0 %v1187_v0 }
 0x2f7   : > { %v583_v35 = vpop.f32.mrb[8].mxu0 }
 0x2f8   : > { %v584_v36 = vadd.f32 %v583_v35, %v488_v34  ;;  %v585_v37 = vpop.f32.mrb[9].mxu0 }
 0x2f9   : > { %v586_v38 = vadd.f32 %v585_v37, %v488_v34 }
 0x2fa   : > { %1056 = vtanh.f32 %v584_v36 }
 0x2fb   : > { %v589_v40 = vpop.f32.mrb[10].mxu0  ;;  %1058 = vtanh.f32 %v586_v38  ;;  %v205_v38 = vld [vmem:[%s1512_s1 + $0x80] sm:$0xff] }
 0x2fc   : > { %v590_v41 = vadd.f32 %v589_v40, %v493_v39  ;;  %v591_v42 = vpop.f32.mrb[11].mxu0 }
 0x2fd   : > { %v592_v43 = vadd.f32 %v591_v42, %v493_v39 }
 0x2fe   : > { %1060 = vtanh.f32 %v590_v41 }
 0x2ff   : > { %1062 = vtanh.f32 %v592_v43  ;;  %v595_v45 = vpop.f32.mrb[12].mxu0 }
 0x300   : > { %v596_v46 = vadd.f32 %v595_v45, %v498_v44  ;;  %v597_v47 = vpop.f32.mrb[13].mxu0 }
 0x301   : > { %v598_v48 = vadd.f32 %v597_v47, %v498_v44 }
 0x302   : > { %1064 = vtanh.f32 %v596_v46 }
 0x303   : > { %v601_v50 = vpop.f32.mrb[14].mxu0  ;;  %1066 = vtanh.f32 %v598_v48 }
 0x304   : > { %v602_v51 = vadd.f32 %v601_v50, %v503_v49  ;;  %v603_v52 = vpop.f32.mrb[15].mxu0  ;;  %v1057_v54 = vpop.eup %1056 }
 0x305   : > { %v604_v53 = vadd.f32 %v603_v52, %v503_v49  ;;  %v1059_v55 = vpop.eup %1058 }
 0x306   : > { %1068 = vtanh.f32 %v602_v51 }
 0x307   : > { %1070 = vtanh.f32 %v604_v53 }
 0x308   : > { %v1061_v56 = vpop.eup %1060 }
 0x309   : > { %v1063_v57 = vpop.eup %1062  ;;  %v960_v58 = vpack.c.bf16 %v1061_v56, %v1057_v54 }
 0x30a   : > { %v958_v59 = vpack.c.bf16 %v1063_v57, %v1059_v55 }
 0x30c   : > { %959 = vmatprep.subr.bf16.mxu1 %v958_v59  ;;  %v1065_v60 = vpop.eup %1064 }
 0x30d   : > { %961 = vmatpush1.bf16.msra.mxu1 %v960_v58  ;;  %v1067_v61 = vpop.eup %1066 }
 0x310   : > { %v1069_v62 = vpop.eup %1068 }
 0x311   : > { %v1071_v63 = vpop.eup %1070  ;;  %v964_v1 = vpack.c.bf16 %v1069_v62, %v1065_v60 }
 0x312   : > { %v962_v2 = vpack.c.bf16 %v1071_v63, %v1067_v61 }
 0x314   : > { %963 = vmatprep.subr.bf16.mxu1 %v962_v2 }
 0x315   : > { %965 = vmatpush1.bf16.msra.mxu1 %v964_v1 }
 0x318   : > { %930 = vmatmul.mubr.msk.f32.vlgmr.msra.gmra.mrb[8].mxu1 %vm375_vm1, %v201_v3 }
 0x319   : > { %716 = vmatprep.mubr.f32.mxu1 %v1187_v0 }
 0x31c   : > { %931 = vmatmul.mubr.msk.f32.gmra.mrb[10].mxu1 %vm375_vm1, %v202_v4 }
 0x31d   : > { %722 = vmatprep.mubr.f32.mxu1 %v1187_v0 }
 0x320   : > { %932 = vmatmul.mubr.msk.f32.gmra.mrb[12].mxu1 %vm375_vm1, %v203_v5 }
 0x321   : > { %728 = vmatprep.mubr.f32.mxu1 %v1187_v0  ;;  %v627_v0 = vpop.permute.xlu0 %626 }
 0x324   : > { %933 = vmatmul.mubr.msk.f32.gmra.mrb[14].mxu1 %vm375_vm1, %v204_v6 }
 0x325   : > { %v746_v39 = vpop.permute.xlu0 %745 }
 0x3eb   : > { %v712_v8 = vpop.f32.mrb[8].mxu1 }
 0x3ec   : > { %v713_v9 = vadd.f32 %v712_v8, %v617_v7  ;;  %v714_v10 = vpop.f32.mrb[9].mxu1 }
 0x3ed   : > { %v715_v11 = vadd.f32 %v714_v10, %v617_v7 }
 0x3ee   : > { %1072 = vtanh.f32 %v713_v9 }
 0x3ef   : > { %v718_v13 = vpop.f32.mrb[10].mxu1  ;;  %1074 = vtanh.f32 %v715_v11 }
 0x3f0   : > { %v719_v14 = vadd.f32 %v718_v13, %v622_v12  ;;  %v720_v15 = vpop.f32.mrb[11].mxu1 }
 0x3f1   : > { %v721_v16 = vadd.f32 %v720_v15, %v622_v12 }
 0x3f2   : > { %1076 = vtanh.f32 %v719_v14 }
 0x3f3   : > { %1078 = vtanh.f32 %v721_v16  ;;  %v724_v17 = vpop.f32.mrb[12].mxu1 }
 0x3f4   : > { %v725_v18 = vadd.f32 %v724_v17, %v627_v0  ;;  %v726_v19 = vpop.f32.mrb[13].mxu1 }
 0x3f5   : > { %v727_v20 = vadd.f32 %v726_v19, %v627_v0 }
 0x3f6   : > { %1080 = vtanh.f32 %v725_v18 }
 0x3f7   : > { %v730_v22 = vpop.f32.mrb[14].mxu1  ;;  %1082 = vtanh.f32 %v727_v20 }
 0x3f8   : > { %v731_v23 = vadd.f32 %v730_v22, %v632_v21  ;;  %v732_v24 = vpop.f32.mrb[15].mxu1  ;;  %v1073_v26 = vpop.eup %1072 }
 0x3f9   : > { %v733_v25 = vadd.f32 %v732_v24, %v632_v21  ;;  %v1075_v27 = vpop.eup %1074 }
 0x3fa   : > { %1084 = vtanh.f32 %v731_v23 }
 0x3fb   : > { %1086 = vtanh.f32 %v733_v25 }
 0x3fc   : > { %v1077_v28 = vpop.eup %1076 }
 0x3fd   : > { %v1079_v29 = vpop.eup %1078  ;;  %v968_v30 = vpack.c.bf16 %v1077_v28, %v1073_v26 }
 0x3fe   : > { %v966_v31 = vpack.c.bf16 %v1079_v29, %v1075_v27 }
 0x400   : > { %967 = vmatprep.subr.bf16.mxu0 %v966_v31  ;;  %v1081_v32 = vpop.eup %1080 }
 0x401   : > { %969 = vmatpush1.bf16.msra.mxu0 %v968_v30  ;;  %v1083_v33 = vpop.eup %1082 }
 0x404   : > { %v1085_v34 = vpop.eup %1084 }
 0x405   : > { %v1087_v35 = vpop.eup %1086  ;;  %v972_v36 = vpack.c.bf16 %v1085_v34, %v1081_v32 }
 0x406   : > { %v970_v37 = vpack.c.bf16 %v1087_v35, %v1083_v33 }
 0x408   : > { %971 = vmatprep.subr.bf16.mxu0 %v970_v37 }
 0x409   : > { %973 = vmatpush1.bf16.msra.mxu0 %v972_v36 }
 0x40c   : > { %934 = vmatmul.mubr.msk.f32.vlgmr.msra.gmra.mrb[16].mxu0 %vm375_vm1, %v205_v38 }
 0x4df   : > { %v817_v40 = vpop.f32.mrb[16].mxu0 }
 0x4e0   : > { %v818_v41 = vadd.f32 %v817_v40, %v746_v39  ;;  %v819_v42 = vpop.f32.mrb[17].mxu0 }
 0x4e1   : > { %v820_v43 = vadd.f32 %v819_v42, %v746_v39 }
 0x4e2   : > { %822 = vst [vmem:[%s186_s10] sm:$0x1f] %v818_v41 }
 0x4e3   : > { %823 = vst [vmem:[%s186_s10 + $0x8] sm:$0x1f] %v820_v43 }
 0x4e4   : > { %1131 = shalt.err (!%p1128_p4)
}
 0x4e5   : > { %s1132_s29 = scalar_lea.hbm %s1467_s20, 256  ;;  %s1136_s7 = scalar_lea.hbm %s1514_s3, 512 }
 0x4e6   : > { %p1133_p5 = scmp.ne.s32.totalorder %s1467_s20, %s1132_s29  ;;  %p1137_p0 = scmp.lt.u32.totalorder %s1467_s20, %s1514_s3 }
 0x4e7   : > { %p1138_p1 = scmp.lt.u32.totalorder %s1136_s7, %s1132_s29  ;;  %p1140_p6 = scmp.lt.u32.totalorder %s1132_s29, %s1467_s20 }
 0x4e8   : > { %p1134_p8 = pnand %p1133_p5, %p1523_p11 }
 0x4e9   : > { %p1139_p3 = por %p1138_p1, %p1137_p0 }
 0x4ea   : > { %p1135_p9 = pneg %p1134_p8 }
 0x4eb   : > { %p1141_p12 = por %p1140_p6, %p1139_p3 }
 0x4ed   : > { %p1142_p13 = pnand %p1141_p12, %p1135_p9 }
 0x4ef   : > { %1145 = shalt.err (!%p1142_p13)
}
 0x4f0   : > { %976 = dma.vmem_to_hbm [thread:$0]  (%p1523_p11), %s1469_s11, 256, %s1467_s20, %s825_s16  }
 0x4f1 PF: > { %s851_s8 = sand.u32 1, %s1172_s12   ;;  %p1524_p7 = scmp.ne.s32.totalorder %s1519_s25, 0 }
 0x4f2   : > { %p1525_p10 = scmp.ge.s32.totalorder %s1184_s15, 2  ;;  %s852_s23 = scalar_lea.sflag [#allocation4], %s851_s8 }
 0x4f4   : > { %p983_p2 = pnand %p1525_p10, %p1524_p7 }
 0x4f6   : > { %1167 = dma.done.wait (!%p983_p2), %s852_s23, 256  }
 0x4f7   : > { %1169 = vsyncadd (!%p983_p2), %s852_s23, 4294967040  ;;  %p16_p4 = scmp.ge.s32.totalorder %s1235_s18, 4   ;;  %s1526_s12 = smov %s1176_s13 }
 0x4f8   : > { %s1527_s13 = smov %s1180_s14  ;;  %s1528_s14 = smov %s1247_s21 }
 0x4f9   : > { %s1529_s15 = smov %s1235_s18  ;;  %18 = sbr.rel (!%p16_p4) target bundleno = 5 (0x5), region = 77 }
 0x500   :  { %857 = vsyncpa [#allocation3], 1 }
 0x501   :  { %859 = vsyncpa [#allocation3 + $0x1], 1 }
 0x502   :  { %860 = vsyncpa [#allocation4], 1 }
 0x503   :  { %862 = vsyncpa [#allocation4 + $0x1], 1 }

</bundles_post_ra>
